<compile_context>
chip_gen: v6e
topology: v6e:2x2x1
jax: 0.10.0
libtpu: 0.0.40
codegen_flags: <defaults>
</compile_context>

<pallas_src>
import jax
import jax.numpy as jnp
from jax.experimental import pallas as pl
from jax.experimental.pallas import tpu as pltpu

# ----------------------- config (small, synthetic) -----------------------
B = 32            # batch (small, but large enough for a 4-step grid)
S = 8             # sequence length
HIDDEN_SIZE = 32
FLAT_MLP_SIZE = 64
FLAT_GLIMPSES = 1
FLAT_OUT_SIZE = 64
DROPOUT_R = 0.1   # unused (eval mode)

NEG_INF = -1e9


def attflat_kernel(x_ref, maskadd_ref,
                   w1_ref, b1_ref, w2_ref, b2_ref, wm_ref, bm_ref,
                   out_ref):
    # x_ref:       (bt*S, H)  bf16   pre-flattened row slab
    # maskadd_ref: (bt, S)    f32    additive mask (NEG_INF on padded positions)
    # w1:(H,mid) bf16   b1:(1,mid) f32
    # w2:(1,mid) f32 when G==1, else (mid,G) f32;  b2:(1,G) f32
    # wm:(G*H, OUT_PAD) bf16   bm:(1, OUT_PAD) f32
    # out_ref:     (bt, OUT_PAD) f32
    bt, s = maskadd_ref.shape
    rows, h = x_ref.shape                       # rows == bt * s
    g = b2_ref.shape[-1]

    x2 = x_ref[...]                             # bf16 [rows, H]

    # ---- MLP: Linear -> ReLU -> (dropout = identity in eval) ----
    hid = jnp.dot(x2, w1_ref[...], preferred_element_type=jnp.float32)
    hid = jnp.maximum(hid + b1_ref[...], 0.0)   # f32 [rows, mid]

    mask_add = maskadd_ref[...]                 # f32 [bt, S]
    # [rows, *] -> [bt, S, *] splits are layout-preserving because S % 8 == 0
    x3 = x2.reshape(bt, s, h).astype(jnp.float32)

    if g == 1:
        # mid -> 1 projection as a VPU multiply + lane reduce (avoids an
        # N=1 MXU matmul); result is already the lane-dense [bt, S] logit map.
        hid3 = hid.reshape(bt, s, -1)
        att = jnp.sum(hid3 * w2_ref[...], axis=-1) + b2_ref[...] + mask_add
        # softmax over the sequence axis (dim=1 in the torch code)
        att = att - jnp.max(att, axis=-1, keepdims=True)
        att = jnp.exp(att)
        att = att * pl.reciprocal(jnp.sum(att, axis=-1, keepdims=True),
                                  approx=True)                    # [bt, S]
        # glimpse-weighted sum: VPU multiply + sublane reduce (MXU stays free)
        flat = jnp.sum(att[:, :, None] * x3, axis=1)              # [bt, H]
    else:
        logits = jnp.dot(hid, w2_ref[...],
                         preferred_element_type=jnp.float32) + b2_ref[...]
        att = logits.reshape(bt, s, g) + mask_add[:, :, None]
        att = att - jnp.max(att, axis=1, keepdims=True)
        att = jnp.exp(att)
        att = att * pl.reciprocal(jnp.sum(att, axis=1, keepdims=True),
                                  approx=True)
        flat = jnp.einsum('bsg,bsh->bgh', att, x3,
                          preferred_element_type=jnp.float32).reshape(bt, g * h)

    # ---- linear_merge (lane-dense padded output store) ----
    out = jnp.dot(flat.astype(jnp.bfloat16), wm_ref[...],
                  preferred_element_type=jnp.float32) + bm_ref[...]
    out_ref[...] = out.astype(out_ref.dtype)


def _pick_bt(bsz):
    """Batch tile: multiple of 8 (sublane rule), aiming for >= 4 grid steps."""
    if bsz % 8 != 0:
        return bsz                       # fall back: whole batch in one step
    bt = max(8, ((bsz // 4) // 8) * 8)
    while bsz % bt:
        bt -= 8
    return bt


def attflat(x, x_mask, params, *, bt=None):
    """x: [B,S,H] float32, x_mask: [B,1,1,S] bool -> [B, FLAT_OUT_SIZE] f32."""
    w1, b1, w2, b2, wm, bm = params
    bsz, seq, hid = x.shape
    glimpses = w2.shape[-1]
    out_size = wm.shape[-1]

    if bt is None:
        bt = _pick_bt(bsz)
    assert bsz % bt == 0, "batch tile must divide batch"
    assert bt % 8 == 0 or bt == bsz, "bt must be a multiple of 8 or the full batch"
    nb = bsz // bt

    # ---- wrapper-side (free XLA) data prep ----
    # pre-flatten + bf16 cast: DMA lands in the layout the MXU matmul wants,
    # and the dominant x read moves half the HBM bytes.
    x2d = x.reshape(bsz * seq, hid).astype(jnp.bfloat16)
    # additive mask: NEG_INF where masked, 0 elsewhere (single vadd in-kernel)
    mask_add = x_mask.reshape(bsz, seq).astype(jnp.float32) * NEG_INF
    # bf16 weights for the MXU dots; biases / VPU-path weights stay f32
    w1_k = w1.astype(jnp.bfloat16)
    if glimpses == 1:
        w2_k = w2.reshape(1, -1).astype(jnp.float32)   # row vector for VPU path
    else:
        w2_k = w2.astype(jnp.float32)
    # lane-dense output: pad the merge weights/bias (and output) to 128 lanes
    out_pad = ((out_size + 127) // 128) * 128
    wm_k = jnp.zeros((wm.shape[0], out_pad), jnp.bfloat16
                     ).at[:, :out_size].set(wm.astype(jnp.bfloat16))
    bm_k = jnp.zeros((1, out_pad), jnp.float32
                     ).at[:, :out_size].set(bm.reshape(1, -1))

    full = lambda a: pl.BlockSpec(a.shape, lambda i: (0,) * a.ndim)

    out_padded = pl.pallas_call(
        attflat_kernel,
        out_shape=jax.ShapeDtypeStruct((bsz, out_pad), jnp.float32),
        grid=(nb,),
        in_specs=[
            pl.BlockSpec((bt * seq, hid), lambda i: (i, 0)),   # x row slab
            pl.BlockSpec((bt, seq), lambda i: (i, 0)),         # additive mask
            full(w1_k), full(b1), full(w2_k), full(b2), full(wm_k), full(bm_k),
        ],
        out_specs=pl.BlockSpec((bt, out_pad), lambda i: (i, 0)),
        compiler_params=pltpu.CompilerParams(
            dimension_semantics=("parallel",),
            vmem_limit_bytes=32 * 1024 * 1024,
        ),
    )(x2d, mask_add, w1_k, b1, w2_k, b2, wm_k, bm_k)

    return out_padded[:, :out_size]


def attflat_ref(x, x_mask, params):
    """Pure-JAX f32 reference mirroring the PyTorch forward (eval mode)."""
    w1, b1, w2, b2, wm, bm = params
    bsz, seq, _ = x.shape
    g = w2.shape[-1]
    att = jnp.maximum(x @ w1 + b1, 0.0) @ w2 + b2                  # [B,S,G]
    m = x_mask.reshape(bsz, seq)[:, :, None]                       # [B,S,1]
    att = jnp.where(m, NEG_INF, att)
    att = jax.nn.softmax(att, axis=1)
    att_list = [jnp.sum(att[:, :, i:i + 1] * x, axis=1) for i in range(g)]
    x_atted = jnp.concatenate(att_list, axis=1)                    # [B, G*H]
    return x_atted @ wm + bm


def init_params(key):
    ks = jax.random.split(key, 6)
    scale = 0.02
    w1 = scale * jax.random.normal(ks[0], (HIDDEN_SIZE, FLAT_MLP_SIZE), jnp.float32)
    b1 = scale * jax.random.normal(ks[1], (1, FLAT_MLP_SIZE), jnp.float32)
    w2 = scale * jax.random.normal(ks[2], (FLAT_MLP_SIZE, FLAT_GLIMPSES), jnp.float32)
    b2 = scale * jax.random.normal(ks[3], (1, FLAT_GLIMPSES), jnp.float32)
    wm = scale * jax.random.normal(ks[4], (FLAT_GLIMPSES * HIDDEN_SIZE, FLAT_OUT_SIZE), jnp.float32)
    bm = scale * jax.random.normal(ks[5], (1, FLAT_OUT_SIZE), jnp.float32)
    return (w1, b1, w2, b2, wm, bm)


if __name__ == "__main__":
    key = jax.random.PRNGKey(0)
    k_x, k_p = jax.random.split(key)
    x = jax.random.normal(k_x, (B, S, HIDDEN_SIZE), jnp.float32)
    # deterministic variable-length padding: row b has (4 + b % 4) valid tokens
    lengths = 4 + (jnp.arange(B) % 4)
    x_mask = (jnp.arange(S)[None, :] >= lengths[:, None]).reshape(B, 1, 1, S)
    params = init_params(k_p)

    out = attflat(x, x_mask, params)
    out = jax.block_until_ready(out)

    ref = attflat_ref(x, x_mask, params)
    assert out.shape == (B, FLAT_OUT_SIZE)
    # bf16 MXU operands (x, w1, wm) + approx-reciprocal softmax -> loose tolerance vs f32 ref
    assert jnp.allclose(out, ref, atol=1e-2, rtol=1e-2), "mismatch vs reference"

    print("KERNEL_OK")
</pallas_src>

<mosaic_0001>
module attributes {stable_mosaic.version = 11 : i64} {
  func.func @attflat_kernel(%arg0: i32, %arg1: memref<64x32xbf16, #tpu.memory_space<vmem>>, %arg2: memref<8x8xf32, #tpu.memory_space<vmem>>, %arg3: memref<32x64xbf16, #tpu.memory_space<vmem>>, %arg4: memref<1x64xf32, #tpu.memory_space<vmem>>, %arg5: memref<1x64xf32, #tpu.memory_space<vmem>>, %arg6: memref<1x1xf32, #tpu.memory_space<vmem>>, %arg7: memref<32x128xbf16, #tpu.memory_space<vmem>>, %arg8: memref<1x128xf32, #tpu.memory_space<vmem>>, %arg9: memref<8x128xf32, #tpu.memory_space<vmem>>) attributes {dimension_semantics = [#tpu.dimension_semantics<parallel>], iteration_bounds = array<i64: 4>, scalar_prefetch = 0 : i64, scratch_operands = 0 : i64, tpu.core_type = #tpu.core_type<tc>, window_params = [{transform_indices = @transform_0, window_bounds = array<i64: 64, 32>}, {transform_indices = @transform_1, window_bounds = array<i64: 8, 8>}, {pipeline_mode = #tpu.pipeline_mode<synchronous>, transform_indices = @transform_2, window_bounds = array<i64: 32, 64>}, {pipeline_mode = #tpu.pipeline_mode<synchronous>, transform_indices = @transform_3, window_bounds = array<i64: 1, 64>}, {pipeline_mode = #tpu.pipeline_mode<synchronous>, transform_indices = @transform_4, window_bounds = array<i64: 1, 64>}, {pipeline_mode = #tpu.pipeline_mode<synchronous>, transform_indices = @transform_5, window_bounds = array<i64: 1, 1>}, {pipeline_mode = #tpu.pipeline_mode<synchronous>, transform_indices = @transform_6, window_bounds = array<i64: 32, 128>}, {pipeline_mode = #tpu.pipeline_mode<synchronous>, transform_indices = @transform_7, window_bounds = array<i64: 1, 128>}, {transform_indices = @transform_8, window_bounds = array<i64: 8, 128>}]} {
    %c0 = arith.constant 0 : index
    %c0_0 = arith.constant 0 : index
    %0 = vector.load %arg1[%c0, %c0_0] : memref<64x32xbf16, #tpu.memory_space<vmem>>, vector<64x32xbf16>
    %c0_1 = arith.constant 0 : index
    %c0_2 = arith.constant 0 : index
    %1 = vector.load %arg3[%c0_1, %c0_2] : memref<32x64xbf16, #tpu.memory_space<vmem>>, vector<32x64xbf16>
    %cst = arith.constant dense<0.000000e+00> : vector<64x64xf32>
    %2 = tpu.matmul %0, %1, %cst {dimension_numbers = #tpu.dot_dimension_numbers<[1], [0], [0], [1], [0, 0, 1, 1], [], []>} : vector<64x32xbf16>, vector<32x64xbf16>, vector<64x64xf32> -> vector<64x64xf32>
    %c0_3 = arith.constant 0 : index
    %c0_4 = arith.constant 0 : index
    %3 = vector.load %arg4[%c0_3, %c0_4] : memref<1x64xf32, #tpu.memory_space<vmem>>, vector<1x64xf32>
    %4 = vector.broadcast %3 : vector<1x64xf32> to vector<64x64xf32>
    %5 = arith.addf %2, %4 : vector<64x64xf32>
    %cst_5 = arith.constant 0.000000e+00 : f32
    %6 = vector.broadcast %cst_5 : f32 to vector<64x64xf32>
    %7 = arith.maximumf %5, %6 : vector<64x64xf32>
    %c0_6 = arith.constant 0 : index
    %c0_7 = arith.constant 0 : index
    %8 = vector.load %arg2[%c0_6, %c0_7] : memref<8x8xf32, #tpu.memory_space<vmem>>, vector<8x8xf32>
    %9 = vector.shape_cast %0 : vector<64x32xbf16> to vector<8x8x32xbf16>
    %10 = arith.extf %9 : vector<8x8x32xbf16> to vector<8x8x32xf32>
    %11 = vector.shape_cast %7 : vector<64x64xf32> to vector<8x8x64xf32>
    %c0_8 = arith.constant 0 : index
    %c0_9 = arith.constant 0 : index
    %12 = vector.load %arg5[%c0_8, %c0_9] : memref<1x64xf32, #tpu.memory_space<vmem>>, vector<1x64xf32>
    %13 = vector.shape_cast %12 : vector<1x64xf32> to vector<1x1x64xf32>
    %14 = vector.broadcast %13 : vector<1x1x64xf32> to vector<8x8x64xf32>
    %15 = arith.mulf %11, %14 : vector<8x8x64xf32>
    %cst_10 = arith.constant dense<0.000000e+00> : vector<8x8xf32>
    %16 = vector.multi_reduction <add>, %15, %cst_10 [2] : vector<8x8x64xf32> to vector<8x8xf32>
    %c0_11 = arith.constant 0 : index
    %c0_12 = arith.constant 0 : index
    %17 = vector.load %arg6[%c0_11, %c0_12] : memref<1x1xf32, #tpu.memory_space<vmem>>, vector<1x1xf32>
    %18 = vector.broadcast %17 : vector<1x1xf32> to vector<8x8xf32>
    %19 = arith.addf %16, %18 : vector<8x8xf32>
    %20 = arith.addf %19, %8 : vector<8x8xf32>
    %cst_13 = arith.constant dense<0xFF800000> : vector<8xf32>
    %21 = vector.multi_reduction <maximumf>, %20, %cst_13 [1] : vector<8x8xf32> to vector<8xf32>
    %22 = vector.shape_cast %21 : vector<8xf32> to vector<8x1xf32>
    %23 = vector.broadcast %22 : vector<8x1xf32> to vector<8x8xf32>
    %24 = arith.subf %20, %23 : vector<8x8xf32>
    %25 = math.exp %24 : vector<8x8xf32>
    %cst_14 = arith.constant dense<0.000000e+00> : vector<8xf32>
    %26 = vector.multi_reduction <add>, %25, %cst_14 [1] : vector<8x8xf32> to vector<8xf32>
    %27 = vector.shape_cast %26 : vector<8xf32> to vector<8x1xf32>
    %28 = tpu.reciprocal %27 {approx = true} : vector<8x1xf32> -> vector<8x1xf32>
    %29 = vector.broadcast %28 : vector<8x1xf32> to vector<8x8xf32>
    %30 = arith.mulf %25, %29 : vector<8x8xf32>
    %31 = vector.shape_cast %30 : vector<8x8xf32> to vector<8x8x1xf32>
    %32 = vector.broadcast %31 : vector<8x8x1xf32> to vector<8x8x32xf32>
    %33 = arith.mulf %32, %10 : vector<8x8x32xf32>
    %cst_15 = arith.constant dense<0.000000e+00> : vector<8x32xf32>
    %34 = vector.multi_reduction <add>, %33, %cst_15 [1] : vector<8x8x32xf32> to vector<8x32xf32>
    %35 = arith.truncf %34 : vector<8x32xf32> to vector<8x32xbf16>
    %c0_16 = arith.constant 0 : index
    %c0_17 = arith.constant 0 : index
    %36 = vector.load %arg7[%c0_16, %c0_17] : memref<32x128xbf16, #tpu.memory_space<vmem>>, vector<32x128xbf16>
    %cst_18 = arith.constant dense<0.000000e+00> : vector<8x128xf32>
    %37 = tpu.matmul %35, %36, %cst_18 {dimension_numbers = #tpu.dot_dimension_numbers<[1], [0], [0], [1], [0, 0, 1, 1], [], []>} : vector<8x32xbf16>, vector<32x128xbf16>, vector<8x128xf32> -> vector<8x128xf32>
    %c0_19 = arith.constant 0 : index
    %c0_20 = arith.constant 0 : index
    %38 = vector.load %arg8[%c0_19, %c0_20] : memref<1x128xf32, #tpu.memory_space<vmem>>, vector<1x128xf32>
    %39 = vector.broadcast %38 : vector<1x128xf32> to vector<8x128xf32>
    %40 = arith.addf %37, %39 : vector<8x128xf32>
    %c0_21 = arith.constant 0 : index
    %c0_22 = arith.constant 0 : index
    %41 = vector.load %arg9[%c0_21, %c0_22] : memref<8x128xf32, #tpu.memory_space<vmem>>, vector<8x128xf32>
    tpu.vector_store %arg9[%c0_21, %c0_22], %40 {strides = array<i32>} : memref<8x128xf32, #tpu.memory_space<vmem>>, vector<8x128xf32>,
    return
  }
  func.func @transform_0(%arg0: i32) -> (i32, i32) {
    %c0_i32 = arith.constant 0 : i32
    %c0_i32_0 = arith.constant 0 : i32
    return %arg0, %c0_i32 : i32, i32
  }
  func.func @transform_1(%arg0: i32) -> (i32, i32) {
    %c0_i32 = arith.constant 0 : i32
    %c0_i32_0 = arith.constant 0 : i32
    return %arg0, %c0_i32 : i32, i32
  }
  func.func @transform_2(%arg0: i32) -> (i32, i32) {
    %c0_i32 = arith.constant 0 : i32
    %c0_i32_0 = arith.constant 0 : i32
    %c0_i32_1 = arith.constant 0 : i32
    return %c0_i32, %c0_i32_0 : i32, i32
  }
  func.func @transform_3(%arg0: i32) -> (i32, i32) {
    %c0_i32 = arith.constant 0 : i32
    %c0_i32_0 = arith.constant 0 : i32
    %c0_i32_1 = arith.constant 0 : i32
    return %c0_i32, %c0_i32_0 : i32, i32
  }
  func.func @transform_4(%arg0: i32) -> (i32, i32) {
    %c0_i32 = arith.constant 0 : i32
    %c0_i32_0 = arith.constant 0 : i32
    %c0_i32_1 = arith.constant 0 : i32
    return %c0_i32, %c0_i32_0 : i32, i32
  }
  func.func @transform_5(%arg0: i32) -> (i32, i32) {
    %c0_i32 = arith.constant 0 : i32
    %c0_i32_0 = arith.constant 0 : i32
    %c0_i32_1 = arith.constant 0 : i32
    return %c0_i32, %c0_i32_0 : i32, i32
  }
  func.func @transform_6(%arg0: i32) -> (i32, i32) {
    %c0_i32 = arith.constant 0 : i32
    %c0_i32_0 = arith.constant 0 : i32
    %c0_i32_1 = arith.constant 0 : i32
    return %c0_i32, %c0_i32_0 : i32, i32
  }
  func.func @transform_7(%arg0: i32) -> (i32, i32) {
    %c0_i32 = arith.constant 0 : i32
    %c0_i32_0 = arith.constant 0 : i32
    %c0_i32_1 = arith.constant 0 : i32
    return %c0_i32, %c0_i32_0 : i32, i32
  }
  func.func @transform_8(%arg0: i32) -> (i32, i32) {
    %c0_i32 = arith.constant 0 : i32
    %c0_i32_0 = arith.constant 0 : i32
    return %arg0, %c0_i32 : i32, i32
  }
}

</mosaic_0001>

<bundles_post_ra>
// kernel: tpu_custom_call.1
= control target key start
LH: loop header
LB: loop body
LE: loop exit
PB: predicated region body
PF: predicated region fallthrough
CT: control target
= control target key end

     0   :  { %s1691_s0 = inlined_call_operand.vmem [shape: bf16[256,32], index: 0, kind: input, shape index: {}]   ;;  %s1692_s1 = inlined_call_operand.vmem [shape: f32[32,8], index: 1, kind: input, shape index: {}]   ;;  %s1693_s2 = inlined_call_operand.vmem [shape: bf16[32,64], index: 2, kind: input, shape index: {}]   ;;  %s1694_s3 = inlined_call_operand.vmem [shape: f32[1,64], index: 3, kind: input, shape index: {}]   ;;  %s1695_s4 = inlined_call_operand.vmem [shape: f32[1,64], index: 4, kind: input, shape index: {}]   ;;  %s1696_s5 = inlined_call_operand.<no memory space> [shape: f32[1,1], index: 5, kind: input, shape index: {}]   ;;  %s1697_s6 = inlined_call_operand.vmem [shape: bf16[32,128], index: 6, kind: input, shape index: {}]   ;;  %s1698_s7 = inlined_call_operand.vmem [shape: f32[1,128], index: 7, kind: input, shape index: {}]   ;;  %s1699_s8 = inlined_call_operand.hbm [shape: f32[32,128], index: 8, kind: output, shape index: {}]  }
   0x1   :  { %v13_v0 = vstv %s1696_s5 }
   0x2   :  { %14 = vst [vmem:[#allocation2] sm:$0x1] %v13_v0 }
   0x3   :  { %15 = vsyncpa [#allocation4], 0 }
   0x4   :  { %17 = vsyncpa [#allocation4 + $0x1], 0  ;;  %s1412_s29 = smov 0   ;;  %s1414_s30 = smov 0  }
   0x5   :  { %s1416_s9 = smov 0   ;;  %s1418_s10 = smov 0  }
   0x6 LB: > { %s1433_s5 = sadd.s32 4294967295, %s1358_s10   ;;  %s1166_s11 = sadd.s32 4294967294, %s1358_s10   ;;  %s1358_s10 = sphi %s1418_s10, %s1705_s10   ;;  %s1354_s9 = sphi %s1416_s9, %s1704_s9   ;;  %s1350_s30 = sphi %s1414_s30, %s1703_s30   ;;  %s1346_s29 = sphi %s1412_s29, %s1702_s29  }
   0x7   : > { %s1437_s12 = sadd.s32 1, %s1358_s10   ;;  %s208_s13 = sadd.s32 1, %s1354_s9 }
   0x8   : > { %s205_s14 = ssub.s32 %s1358_s10, %s1437_s12  ;;  %p218_p0 = scmp.ne.s32.totalorder %s1354_s9, %s1350_s30 }
   0x9   : > { %p206_p1 = scmp.eq.s32.totalorder %s205_s14, 0  ;;  %p219_p2 = scmp.eq.s32.totalorder %s1433_s5, 3 }
   0xa   : > { %p224_p3 = scmp.ne.s32.totalorder %s1350_s30, %s1346_s29  ;;  %p225_p4 = scmp.eq.s32.totalorder %s1166_s11, 3 }
   0xb   : > { %s1448_s15 = scalar_select %p206_p1, %s1354_s9, %s208_s13  }
   0xc   : > { %p1450_p5 = por %p219_p2, %p218_p0  ;;  %p1454_p6 = por %p225_p4, %p224_p3 }
   0xd   : > { %p1169_p7 = scmp.ge.s32.totalorder %s1358_s10, 1  ;;  %p277_p8 = scmp.lt.s32.totalorder %s1358_s10, 5 }
   0xf   : > { %p278_p9 = pnand %p1169_p7, %p277_p8 }
  0x10   : > { %s1171_s20 = sshll.u32 (!%p278_p9), %s1433_s5, 3  ;;  %p321_p11 = scmp.lt.s32.totalorder (!%p278_p9), %s1433_s5, 3 }
  0x11   : > { %281 = sbr.rel (%p278_p9) target bundleno = 1436 (0x59c), region = 52  ;;  %p316_p10 = scmp.lt.s32.totalorder (!%p278_p9), %s1171_s20, 31 }
  0x12   : > { %s1192_s13 = sshll.u32 (!%p278_p9), %s1433_s5, 7 }
  0x16   : > { %v1268_v1 = vld [vmem:[%s1693_s2 + $0x8] sm:$0xff]   ;;  %v1269_v2 = vld [vmem:[%s1693_s2] sm:$0xff]   ;;  %s1707_s20 = smov (!%p316_p10, %s1171_s20), 31  ;;  %vm377_vm0 = vcmask 261120   ;;  %v1360_v7 = vmov 0   ;;  %vm487_vm1 = vcmask 523264   ;;  %v531_v34 = vlaneseq }
  0x17   : > { %1204 = vmatprep.subr.bf16.mxu0 %v1268_v1  ;;  %s1172_s23 = sshll.u32 %s1707_s20, 2  ;;  %1266 = vset.pattern.permute.xlu0 %v1360_v7  ;;  %v1174_v8 = vld [vmem:[%s1694_s3] ss:$0 sm:$0xff]  ;;  %vm669_vm2 = vcmask 1041409   ;;  %vm671_vm3 = vcmask 1042434   ;;  %vm673_vm4 = vcmask 1043459  }
  0x18   : > { %1205 = vmatpush3.bf16.msra.mxu0 %v1268_v1  ;;  %s319_s26 = scalar_lea.vmem %s1691_s0, %s1172_s23  ;;  %1267 = vset.pattern.permute.xlu1 %v1360_v7  ;;  %v1185_v12 = vld [vmem:[%s1695_s4] ss:$0 sm:$0xff]  ;;  %v1500_v45 = vshrl.u32 %v531_v34, 7  ;;  %vm675_vm5 = vcmask 1044484   ;;  %vm677_vm6 = vcmask 1045509   ;;  %vm679_vm7 = vcmask 1046534  }
  0x19   : > { %1206 = vmatprep.subr.bf16.mxu0 %v1269_v2  ;;  %v1470_v3 = vld [vmem:[%s319_s26] sm:$0xff]   ;;  %v1472_v4 = vld [vmem:[%s319_s26 + $0x8] sm:$0xff]   ;;  %v1474_v5 = vld [vmem:[%s319_s26 + $0x10] sm:$0xff]   ;;  %s322_s14 = scalar_select %p321_p11, %s1433_s5, 3  ;;  %vm681_vm8 = vcmask 1047559   ;;  %vm684_vm9 = vcmask 64512  }
  0x1a   : > { %1208 = vmatprep.mubr.msk.bf16.mxu0 %vm377_vm0, %v1470_v3  ;;  %v1482_v6 = vld [vmem:[%s319_s26 + $0x18] sm:$0xff]   ;;  %v1508_v51 = vsub.s32 0, %v1500_v45  ;;  %v1513_v55 = vsub.s32 1, %v1500_v45  ;;  %v1517_v57 = vsub.s32 2, %v1500_v45  ;;  %v1521_v59 = vsub.s32 3, %v1500_v45  ;;  %s312_s26 = sand.u32 1, %s1350_s30  }
  0x1b   : > { %s1173_s18 = sshll.u32 %s322_s14, 3  ;;  %v1525_v61 = vsub.s32 4, %v1500_v45  ;;  %v1186_v62 = vld [vmem:[#allocation2] ss:$0 sm:$0xff]  ;;  %v1529_v0 = vsub.s32 5, %v1500_v45  ;;  %vm1362_vm10 = vmmov 0  }
  0x1c   : > { %1207 = vmatpush3.bf16.msra.mxu0 %v1269_v2  ;;  %s324_s21 = scalar_lea.vmem %s1692_s1, %s1173_s18  ;;  %v1533_v2 = vsub.s32 6, %v1500_v45  ;;  %s1170_s27 = sshll.u32 %s312_s26, 3 }
  0x1d   : > { %v463_v53 = vld [vmem:[%s324_s21] sm:$0xff]  ;;  %s314_s14 = scalar_lea.vmem [#allocation3], %s1170_s27  ;;  %s1650_s21 = scalar_lea.hbm %s1699_s8, %s1192_s13 }
  0x1e   : > { %v534_v54 = vrot.slane %v463_v53, %v1508_v51  ;;  %v541_v56 = vrot.slane %v463_v53, %v1513_v55  ;;  %v548_v58 = vrot.slane %v463_v53, %v1517_v57  ;;  %v555_v60 = vrot.slane %v463_v53, %v1521_v59  ;;  %s1095_s18 = sshll.u32 %s314_s14, 4  ;;  %s1082_s22 = scalar_lea.sflag [#allocation4], %s312_s26  ;;  %s1652_s18 = int_to_ptr.vmem [resolvable:$true] %s1095_s18 }
  0x1f   : > { %1209 = vmatmul.mubr.msk.bf16.vlgmr.msra.gmra.mxu0 %vm377_vm0, %v1472_v4  ;;  %v562_v63 = vrot.slane %v463_v53, %v1525_v61  ;;  %v569_v1 = vrot.slane %v463_v53, %v1529_v0  ;;  %v576_v7 = vrot.slane %v463_v53, %v1533_v2  ;;  %s1298_s23 = scalar_lea.vmem %s1652_s18, 128  ;;  %s1363_s5 = smov [#allocation3]  }
  0x20   : > { %1212 = vmatprep.mubr.msk.bf16.mxu0 %vm377_vm0, %v1474_v5  ;;  %p1299_p12 = scmp.ne.s32.totalorder %s1652_s18, %s1298_s23  ;;  %s1302_s24 = sshll.u32 %s1363_s5, 4  ;;  %s1303_s24 = int_to_ptr.vmem [resolvable:$false] %s1302_s24 }
  0x21   : > { %s1304_s25 = scalar_lea.vmem %s1303_s24, 256  ;;  %p1305_p1 = scmp.lt.s32.totalorder %s1652_s18, %s1303_s24 }
  0x22   : > { %p1300_p13 = pnand %p1299_p12, %p1450_p5  ;;  %p1306_p2 = scmp.lt.s32.totalorder %s1304_s25, %s1298_s23 }
  0x24   : > { %p1301_p0 = pneg %p1300_p13  ;;  %p1307_p3 = por %p1306_p2, %p1305_p1 }
  0x26   : > { %p1308_p4 = pnand %p1307_p3, %p1301_p0 }
  0x27   : > { %1213 = vmatmul.mubr.msk.bf16.gmra.mxu0 %vm377_vm0, %v1482_v6 }
  0xdf   : > { %v1210_v9 = vpop.f32.mrf.mxu0 }
  0xe0   : > { %v433_v10 = vadd.f32 %v1210_v9, %v1174_v8 }
  0xe1   : > { %v424_v11 = vpop.f32.mrf.mxu0 }
  0xe2   : > { %v457_v13 = vmax.f32 %v433_v10, 0.0  ;;  %v425_v14 = vadd.f32 %v1174_v8, %v424_v11 }
  0xe3   : > { %v1211_v15 = vpop.f32.mrf.mxu0 }
  0xe4   : > { %v455_v16 = vmax.f32 %v425_v14, 0.0  ;;  %v436_v17 = vadd.f32 %v1211_v15, %v1174_v8  ;;  %v481_v18 = vmul.f32 %v1185_v12, %v457_v13 }
  0xe5   : > { %v427_v19 = vpop.f32.mrf.mxu0 }
  0xe6   : > { %v458_v20 = vmax.f32 %v436_v17, 0.0  ;;  %v428_v21 = vadd.f32 %v1174_v8, %v427_v19  ;;  %v494_v22 = vsel %vm487_vm1, %v481_v18, 0.0  ;;  %v479_v23 = vmul.f32 %v1185_v12, %v455_v16 }
  0xe7   : > { %495 = vadd.xlane.f32.xlu1 %v494_v22  ;;  %v1214_v24 = vpop.f32.mrf.mxu0 }
  0xe8   : > { %v456_v25 = vmax.f32 %v428_v21, 0.0  ;;  %v449_v26 = vadd.f32 %v1214_v24, %v1174_v8  ;;  %v488_v27 = vsel %vm487_vm1, %v479_v23, 0.0  ;;  %v482_v28 = vmul.f32 %v1185_v12, %v458_v20 }
  0xe9   : > { %489 = vadd.xlane.f32.xlu0 %v488_v27  ;;  %v440_v29 = vpop.f32.mrf.mxu0 }
  0xea   : > { %v461_v30 = vmax.f32 %v449_v26, 0.0  ;;  %v497_v31 = vsel %vm487_vm1, %v482_v28, 0.0  ;;  %v441_v32 = vadd.f32 %v1174_v8, %v440_v29  ;;  %v480_v33 = vmul.f32 %v1185_v12, %v456_v25 }
  0xeb   : > { %498 = vadd.xlane.f32.xlu1 %v497_v31  ;;  %v1215_v35 = vpop.f32.mrf.mxu0 }
  0xec   : > { %v459_v36 = vmax.f32 %v441_v32, 0.0  ;;  %v491_v37 = vsel %vm487_vm1, %v480_v33, 0.0  ;;  %v485_v38 = vmul.f32 %v1185_v12, %v461_v30  ;;  %v452_v39 = vadd.f32 %v1215_v35, %v1174_v8 }
  0xed   : > { %492 = vadd.xlane.f32.xlu0 %v491_v37  ;;  %v443_v40 = vpop.f32.mrf.mxu0 }
  0xee   : > { %v506_v41 = vsel %vm487_vm1, %v485_v38, 0.0  ;;  %v483_v42 = vmul.f32 %v1185_v12, %v459_v36  ;;  %v462_v43 = vmax.f32 %v452_v39, 0.0  ;;  %v444_v44 = vadd.f32 %v1174_v8, %v443_v40 }
  0xef   : > { %v1537_v8 = vsub.s32 7, %v1500_v45 }
  0xf0   : > { %v460_v46 = vmax.f32 %v444_v44, 0.0  ;;  %v486_v47 = vmul.f32 %v1185_v12, %v462_v43  ;;  %v500_v48 = vsel %vm487_vm1, %v483_v42, 0.0 }
  0xf1   : > { %507 = vadd.xlane.f32.xlu0 %v506_v41  ;;  %v583_v9 = vrot.slane %v463_v53, %v1537_v8 }
  0xf2   : > { %v509_v49 = vsel %vm487_vm1, %v486_v47, 0.0  ;;  %v484_v50 = vmul.f32 %v1185_v12, %v460_v46  ;;  %v636_v47 = vand.u32 127, %v531_v34 }
  0xf4   : > { %v503_v52 = vsel %vm487_vm1, %v484_v50, 0.0  ;;  %v1557_v50 = vsub.s32 %v636_v47, %v1500_v45 }
  0xf5   : > { %501 = vadd.xlane.f32.xlu0 %v500_v48 }
  0xfc   : > { %536 = vbcast.lane.b32.xlu1 %v534_v54, 256 }
 0x100   : > { %543 = vbcast.lane.b32.xlu1 %v541_v56, 256 }
 0x104   : > { %550 = vbcast.lane.b32.xlu1 %v548_v58, 256 }
 0x108   : > { %557 = vbcast.lane.b32.xlu1 %v555_v60, 256 }
 0x10b   : > { %519 = vperm.xlu0 %1266, %v1186_v62  }
 0x10c   : > { %564 = vbcast.lane.b32.xlu1 %v562_v63, 256 }
 0x110   : > { %571 = vbcast.lane.b32.xlu1 %v569_v1, 256 }
 0x114   : > { %578 = vbcast.lane.b32.xlu1 %v576_v7, 256 }
 0x138   : > { %510 = vadd.xlane.f32.xlu1 %v509_v49 }
 0x13c   : > { %504 = vadd.xlane.f32.xlu1 %v503_v52 }
 0x14d   : > { %585 = vbcast.lane.b32.xlu1 %v583_v9, 256 }
 0x170   : > { %v496_v10 = vpop.xlane.xlu1 %495 }
 0x172   : > { %v490_v11 = vpop.xlane.xlu0 %489 }
 0x174   : > { %v499_v12 = vpop.xlane.xlu1 %498 }
 0x176   : > { %v493_v13 = vpop.xlane.xlu0 %492 }
 0x178   : > { %v537_v14 = vpop.permute.xlu1 %536 }
 0x17a   : > { %v508_v15 = vpop.xlane.xlu0 %507 }
 0x17c   : > { %v544_v16 = vpop.permute.xlu1 %543 }
 0x17e   : > { %v502_v18 = vpop.xlane.xlu0 %501 }
 0x180   : > { %v551_v17 = vpop.permute.xlu1 %550 }
 0x184   : > { %v558_v19 = vpop.permute.xlu1 %557 }
 0x186   : > { %v520_v20 = vpop.permute.xlu0 %519 }
 0x187   : > { %v525_v21 = vadd.f32 %v520_v20, %v499_v12  ;;  %v524_v22 = vadd.f32 %v520_v20, %v496_v10  ;;  %v523_v26 = vadd.f32 %v520_v20, %v493_v13  ;;  %v522_v27 = vadd.f32 %v520_v20, %v490_v11 }
 0x188   : > { %v565_v23 = vpop.permute.xlu1 %564  ;;  %v526_v29 = vadd.f32 %v520_v20, %v502_v18  ;;  %v528_v33 = vadd.f32 %v520_v20, %v508_v15 }
 0x189   : > { %v1540_v24 = vadd.f32 %v558_v19, %v525_v21  ;;  %v1542_v25 = vadd.f32 %v551_v17, %v524_v22  ;;  %v596_v30 = vadd.f32 %v544_v16, %v523_v26  ;;  %v595_v31 = vadd.f32 %v537_v14, %v522_v27 }
 0x18a   : > { %v1546_v32 = vadd.f32 %v565_v23, %v526_v29 }
 0x18b   : > { %621 = vperm.xlu1 %1267, %v1540_v24   ;;  %618 = vperm.xlu0 %1266, %v1542_v25  }
 0x18c   : > { %v572_v28 = vpop.permute.xlu1 %571 }
 0x18f   : > { %615 = vperm.xlu1 %1267, %v596_v30   ;;  %612 = vperm.xlu0 %1266, %v595_v31  }
 0x190   : > { %v579_v35 = vpop.permute.xlu1 %578 }
 0x191   : > { %v1549_v36 = vadd.f32 %v579_v35, %v528_v33 }
 0x193   : > { %624 = vperm.xlu0 %1266, %v1546_v32  }
 0x197   : > { %630 = vperm.xlu0 %1266, %v1549_v36  }
 0x1c1   : > { %v511_v37 = vpop.xlane.xlu1 %510 }
 0x1c2   : > { %v529_v42 = vadd.f32 %v520_v20, %v511_v37 }
 0x1c5   : > { %v505_v38 = vpop.xlane.xlu1 %504 }
 0x1c6   : > { %v527_v39 = vadd.f32 %v520_v20, %v505_v38 }
 0x1c8   : > { %v600_v40 = vadd.f32 %v572_v28, %v527_v39 }
 0x1c9   : > { %v586_v41 = vpop.permute.xlu1 %585 }
 0x1ca   : > { %627 = vperm.xlu1 %1267, %v600_v40   ;;  %v1552_v43 = vadd.f32 %v586_v41, %v529_v42 }
 0x1ce   : > { %633 = vperm.xlu1 %1267, %v1552_v43  }
 0x206   : > { %v622_v44 = vpop.permute.xlu1 %621  ;;  %v619_v46 = vpop.permute.xlu0 %618 }
 0x207   : > { %v648_v56 = vrot.slane %v619_v46, %v1557_v50  ;;  %v652_v34 = vrot.slane %v622_v44, %v1557_v50 }
 0x20a   : > { %v616_v48 = vpop.permute.xlu1 %615  ;;  %v613_v49 = vpop.permute.xlu0 %612 }
 0x20b   : > { %v644_v52 = vrot.slane %v616_v48, %v1557_v50  ;;  %v640_v53 = vrot.slane %v613_v49, %v1557_v50 }
 0x20d   : > { %v670_v54 = vsel %vm669_vm2, %v644_v52, %v640_v53 }
 0x20e   : > { %v625_v58 = vpop.permute.xlu0 %624  ;;  %v672_v60 = vsel %vm671_vm3, %v648_v56, %v670_v54 }
 0x20f   : > { %v656_v62 = vrot.slane %v625_v58, %v1557_v50  ;;  %v674_v45 = vsel %vm673_vm4, %v652_v34, %v672_v60 }
 0x211   : > { %v676_v9 = vsel %vm675_vm5, %v656_v62, %v674_v45 }
 0x212   : > { %v631_v1 = vpop.permute.xlu0 %630 }
 0x213   : > { %v664_v11 = vrot.slane %v631_v1, %v1557_v50 }
 0x245   : > { %v628_v63 = vpop.permute.xlu1 %627 }
 0x246   : > { %v660_v7 = vrot.slane %v628_v63, %v1557_v50 }
 0x248   : > { %v678_v10 = vsel %vm677_vm6, %v660_v7, %v676_v9 }
 0x249   : > { %v634_v12 = vpop.permute.xlu1 %633  ;;  %v680_v14 = vsel %vm679_vm7, %v664_v11, %v678_v10 }
 0x24a   : > { %v668_v13 = vrot.slane %v634_v12, %v1557_v50 }
 0x24c   : > { %v682_v15 = vsel %vm681_vm8, %v668_v13, %v680_v14 }
 0x24d   : > { %v685_v16 = vsel %vm684_vm9, %v682_v15, -inf }
 0x24e   : > { %686 = vmax.xlane.f32.xlu0 %v685_v16 }
 0x2d7   : > { %v687_v17 = vpop.xlane.xlu0 %686 }
 0x2d8   : > { %v692_v18 = vrot.slane %v687_v17, %v1508_v51  ;;  %v696_v19 = vrot.slane %v687_v17, %v1513_v55  ;;  %v700_v20 = vrot.slane %v687_v17, %v1517_v57  ;;  %v704_v26 = vrot.slane %v687_v17, %v1521_v59 }
 0x2d9   : > { %v708_v29 = vrot.slane %v687_v17, %v1525_v61  ;;  %v712_v37 = vrot.slane %v687_v17, %v1529_v0  ;;  %v720_v42 = vrot.slane %v687_v17, %v1537_v8 }
 0x2da   : > { %v729_v21 = vsub.f32 %v595_v31, %v692_v18  ;;  %v730_v22 = vsub.f32 %v596_v30, %v696_v19  ;;  %v731_v27 = vsub.f32 %v1542_v25, %v700_v20  ;;  %v732_v33 = vsub.f32 %v1540_v24, %v704_v26 }
 0x2db   : > { %v733_v38 = vsub.f32 %v1546_v32, %v708_v29  ;;  %v716_v30 = vrot.slane %v687_v17, %v1533_v2  ;;  %v734_v39 = vsub.f32 %v600_v40, %v712_v37  ;;  %v736_v47 = vsub.f32 %v1552_v43, %v720_v42 }
 0x2dc   : > { %v737_v23 = vmul.f32 1.442695, %v729_v21  ;;  %v739_v28 = vmul.f32 1.442695, %v730_v22  ;;  %v741_v35 = vmul.f32 1.442695, %v731_v27 }
 0x2dd   : > { %v743_v31 = vmul.f32 1.442695, %v732_v33  ;;  %v745_v41 = vmul.f32 1.442695, %v733_v38  ;;  %v735_v44 = vsub.f32 %v1549_v36, %v716_v30  ;;  %v747_v24 = vmul.f32 1.442695, %v734_v39 }
 0x2de   : > { %1280 = vpow2.f32 %v737_v23  ;;  %v751_v40 = vmul.f32 1.442695, %v736_v47  ;;  %v471_v47 = vunpack.c.h.bf16 %v1482_v6 }
 0x2df   : > { %1282 = vpow2.f32 %v739_v28  ;;  %v749_v32 = vmul.f32 1.442695, %v735_v44 }
 0x2e0   : > { %1284 = vpow2.f32 %v741_v35 }
 0x2e1   : > { %1286 = vpow2.f32 %v743_v31 }
 0x2e2   : > { %1288 = vpow2.f32 %v745_v41 }
 0x2e3   : > { %1290 = vpow2.f32 %v747_v24 }
 0x2e4   : > { %1292 = vpow2.f32 %v749_v32  ;;  %v466_v32 = vunpack.c.l.bf16 %v1472_v4 }
 0x2e5   : > { %1294 = vpow2.f32 %v751_v40 }
 0x2eb   : > { %v1281_v25 = vpop.eup %1280 }
 0x2ec   : > { %762 = vperm.xlu1 %1267, %v1281_v25   ;;  %v1283_v46 = vpop.eup %1282 }
 0x2ed   : > { %v1285_v48 = vpop.eup %1284 }
 0x2ee   : > { %v1287_v49 = vpop.eup %1286 }
 0x2ef   : > { %v1289_v52 = vpop.eup %1288 }
 0x2f0   : > { %765 = vperm.xlu1 %1267, %v1283_v46   ;;  %v1291_v53 = vpop.eup %1290 }
 0x2f1   : > { %v1293_v36 = vpop.eup %1292 }
 0x2f2   : > { %v1295_v54 = vpop.eup %1294 }
 0x2f4   : > { %768 = vperm.xlu1 %1267, %v1285_v48  }
 0x2f8   : > { %771 = vperm.xlu1 %1267, %v1287_v49  }
 0x2fc   : > { %774 = vperm.xlu1 %1267, %v1289_v52  }
 0x300   : > { %777 = vperm.xlu1 %1267, %v1291_v53  }
 0x304   : > { %780 = vperm.xlu1 %1267, %v1293_v36  }
 0x308   : > { %783 = vperm.xlu1 %1267, %v1295_v54  }
 0x367   : > { %v763_v56 = vpop.permute.xlu1 %762 }
 0x368   : > { %v788_v1 = vrot.slane %v763_v56, %v1557_v50 }
 0x36b   : > { %v766_v58 = vpop.permute.xlu1 %765 }
 0x36c   : > { %v792_v45 = vrot.slane %v766_v58, %v1557_v50 }
 0x36e   : > { %v817_v11 = vsel %vm669_vm2, %v792_v45, %v788_v1  ;;  %v468_v1 = vunpack.c.l.bf16 %v1474_v5 }
 0x36f   : > { %v769_v43 = vpop.permute.xlu1 %768 }
 0x370   : > { %v796_v63 = vrot.slane %v769_v43, %v1557_v50 }
 0x372   : > { %v818_v13 = vsel %vm671_vm3, %v796_v63, %v817_v11 }
 0x373   : > { %v772_v60 = vpop.permute.xlu1 %771 }
 0x374   : > { %v800_v7 = vrot.slane %v772_v60, %v1557_v50 }
 0x376   : > { %v819_v15 = vsel %vm673_vm4, %v800_v7, %v818_v13 }
 0x377   : > { %v775_v34 = vpop.permute.xlu1 %774 }
 0x378   : > { %v804_v9 = vrot.slane %v775_v34, %v1557_v50 }
 0x37a   : > { %v820_v16 = vsel %vm675_vm5, %v804_v9, %v819_v15 }
 0x37b   : > { %v778_v62 = vpop.permute.xlu1 %777 }
 0x37c   : > { %v808_v12 = vrot.slane %v778_v62, %v1557_v50 }
 0x37e   : > { %v821_v18 = vsel %vm677_vm6, %v808_v12, %v820_v16  ;;  %v469_v16 = vunpack.c.h.bf16 %v1474_v5 }
 0x37f   : > { %v781_v10 = vpop.permute.xlu1 %780 }
 0x380   : > { %v812_v14 = vrot.slane %v781_v10, %v1557_v50 }
 0x382   : > { %v822_v20 = vsel %vm679_vm7, %v812_v14, %v821_v18 }
 0x383   : > { %v784_v17 = vpop.permute.xlu1 %783 }
 0x384   : > { %v816_v19 = vrot.slane %v784_v17, %v1557_v50 }
 0x386   : > { %v823_v21 = vsel %vm681_vm8, %v816_v19, %v822_v20 }
 0x387   : > { %v825_v22 = vsel %vm684_vm9, %v823_v21, 0.0 }
 0x388   : > { %826 = vadd.xlane.f32.xlu0 %v825_v22 }
 0x411   : > { %v827_v23 = vpop.xlane.xlu0 %826 }
 0x412   : > { %1296 = vrcp.f32 %v827_v23 }
 0x41f   : > { %v1297_v26 = vpop.eup %1296 }
 0x420   : > { %v837_v27 = vrot.slane %v1297_v26, %v1513_v55  ;;  %v833_v28 = vrot.slane %v1297_v26, %v1508_v51  ;;  %v861_v35 = vrot.slane %v1297_v26, %v1537_v8  ;;  %v841_v50 = vrot.slane %v1297_v26, %v1517_v57 }
 0x421   : > { %v845_v31 = vrot.slane %v1297_v26, %v1521_v59  ;;  %v849_v39 = vrot.slane %v1297_v26, %v1525_v61  ;;  %v853_v51 = vrot.slane %v1297_v26, %v1529_v0  ;;  %v857_v8 = vrot.slane %v1297_v26, %v1533_v2  ;;  %v1274_v59 = vld [vmem:[%s1697_s6 + $0x8] sm:$0xff]   ;;  %v1275_v61 = vld [vmem:[%s1697_s6] sm:$0xff]  }
 0x422   : > { %v871_v29 = vmul.f32 %v1283_v46, %v837_v27  ;;  %v870_v33 = vmul.f32 %v1281_v25, %v833_v28  ;;  %v877_v37 = vmul.f32 %v1295_v54, %v861_v35  ;;  %v872_v38 = vmul.f32 %v1285_v48, %v841_v50 }
 0x423   : > { %v873_v30 = vmul.f32 %v1287_v49, %v845_v31  ;;  %v874_v55 = vmul.f32 %v1289_v52, %v849_v39  ;;  %v875_v41 = vmul.f32 %v1291_v53, %v853_v51  ;;  %v876_v57 = vmul.f32 %v1293_v36, %v857_v8 }
 0x424   : > { %885 = vperm.xlu0 %1266, %v871_v29   ;;  %880 = vperm.xlu1 %1267, %v870_v33   ;;  %v1361_v25 = vmov 0.0   ;;  %v465_v0 = vunpack.c.h.bf16 %v1470_v3  ;;  %v464_v2 = vunpack.c.l.bf16 %v1470_v3  ;;  %v467_v3 = vunpack.c.h.bf16 %v1472_v4 }
 0x425   : > { %1216 = vmatprep.subr.bf16.mxu1 %v1361_v25  ;;  %1220 = vmatprep.mubr.msk.bf16.mxu1 %vm1362_vm10, %v1361_v25  ;;  %v470_v29 = vunpack.c.l.bf16 %v1482_v6 }
 0x426   : > { %1217 = vmatpush3.bf16.msra.mxu1 %v1274_v59 }
 0x427   : > { %1218 = vmatprep.subr.bf16.mxu1 %v1361_v25 }
 0x428   : > { %915 = vperm.xlu0 %1266, %v877_v37   ;;  %890 = vperm.xlu1 %1267, %v872_v38  }
 0x42a   : > { %1219 = vmatpush3.bf16.msra.mxu1 %v1275_v61 }
 0x42c   : > { %895 = vperm.xlu1 %1267, %v873_v30  }
 0x430   : > { %900 = vperm.xlu1 %1267, %v874_v55  }
 0x434   : > { %905 = vperm.xlu1 %1267, %v875_v41  }
 0x438   : > { %910 = vperm.xlu1 %1267, %v876_v57  }
 0x49f   : > { %v886_v42 = vpop.permute.xlu0 %885  ;;  %v881_v44 = vpop.permute.xlu1 %880 }
 0x4a0   : > { %v919_v24 = vmul.f32 %v886_v42, %v465_v0  ;;  %v918_v46 = vmul.f32 %v881_v44, %v464_v2 }
 0x4a2   : > { %v933_v48 = vsel %vm377_vm0, %v919_v24, 0.0  ;;  %v926_v40 = vsel %vm377_vm0, %v918_v46, 0.0 }
 0x4a3   : > { %v934_v49 = vrot.slane %v933_v48, 4  ;;  %v927_v52 = vrot.slane %v926_v40, 4  ;;  %v916_v53 = vpop.permute.xlu0 %915  ;;  %v891_v36 = vpop.permute.xlu1 %890 }
 0x4a4   : > { %v925_v54 = vmul.f32 %v916_v53, %v471_v47  ;;  %v920_v56 = vmul.f32 %v891_v36, %v466_v32 }
 0x4a5   : > { %v935_v58 = vadd.f32 %v934_v49, %v933_v48  ;;  %v928_v43 = vadd.f32 %v927_v52, %v926_v40 }
 0x4a6   : > { %v940_v60 = vsel %vm377_vm0, %v920_v56, 0.0  ;;  %v975_v34 = vsel %vm377_vm0, %v925_v54, 0.0 }
 0x4a7   : > { %v941_v62 = vrot.slane %v940_v60, 4  ;;  %v896_v45 = vpop.permute.xlu1 %895  ;;  %v936_v7 = vrot.slane %v935_v58, 2  ;;  %v929_v9 = vrot.slane %v928_v43, 2  ;;  %v976_v11 = vrot.slane %v975_v34, 4 }
 0x4a8   : > { %v921_v63 = vmul.f32 %v896_v45, %v467_v3 }
 0x4a9   : > { %v942_v10 = vadd.f32 %v941_v62, %v940_v60  ;;  %v937_v17 = vadd.f32 %v936_v7, %v935_v58  ;;  %v930_v18 = vadd.f32 %v929_v9, %v928_v43  ;;  %v977_v19 = vadd.f32 %v976_v11, %v975_v34 }
 0x4aa   : > { %v947_v12 = vsel %vm377_vm0, %v921_v63, 0.0 }
 0x4ab   : > { %v943_v13 = vrot.slane %v942_v10, 2  ;;  %v901_v14 = vpop.permute.xlu1 %900  ;;  %v948_v4 = vrot.slane %v947_v12, 4  ;;  %v938_v33 = vrot.slane %v937_v17, 1  ;;  %v931_v35 = vrot.slane %v930_v18, 1 }
 0x4ac   : > { %v922_v15 = vmul.f32 %v901_v14, %v468_v1  ;;  %v978_v50 = vrot.slane %v977_v19, 2 }
 0x4ad   : > { %v949_v20 = vadd.f32 %v948_v4, %v947_v12  ;;  %v944_v22 = vadd.f32 %v943_v13, %v942_v10  ;;  %v939_v8 = vadd.f32 %v938_v33, %v937_v17  ;;  %v932_v59 = vadd.f32 %v931_v35, %v930_v18 }
 0x4ae   : > { %v954_v21 = vsel %vm377_vm0, %v922_v15, 0.0  ;;  %v979_v25 = vadd.f32 %v978_v50, %v977_v19 }
 0x4af   : > { %v906_v23 = vpop.permute.xlu1 %905  ;;  %v950_v26 = vrot.slane %v949_v20, 2  ;;  %v955_v27 = vrot.slane %v954_v21, 4  ;;  %v945_v31 = vrot.slane %v944_v22, 1  ;;  %v983_v32 = vpack.c.bf16 %v939_v8, %v939_v8 }
 0x4b0   : > { %v923_v28 = vmul.f32 %v906_v23, %v469_v16  ;;  %v982_v48 = vpack.c.bf16 %v932_v59, %v932_v59  ;;  %v980_v40 = vrot.slane %v979_v25, 1 }
 0x4b1   : > { %v951_v37 = vadd.f32 %v950_v26, %v949_v20  ;;  %v956_v38 = vadd.f32 %v955_v27, %v954_v21  ;;  %v946_v0 = vadd.f32 %v945_v31, %v944_v22  ;;  %v1010_v43 = vunpack.c.l.b16 %v983_v32  ;;  %v1187_v22 = vld [vmem:[%s1698_s7] ss:$0 sm:$0xff] }
 0x4b2   : > { %v961_v5 = vsel %vm377_vm0, %v923_v28, 0.0  ;;  %v1009_v60 = vunpack.c.l.b16 %v982_v48  ;;  %v981_v34 = vadd.f32 %v980_v40, %v979_v25 }
 0x4b3   : > { %v962_v30 = vrot.slane %v961_v5, 4  ;;  %v911_v39 = vpop.permute.xlu1 %910  ;;  %v952_v55 = vrot.slane %v951_v37, 1  ;;  %v957_v51 = vrot.slane %v956_v38, 2  ;;  %v984_v52 = vpack.c.bf16 %v946_v0, %v946_v0 }
 0x4b4   : > { %v924_v41 = vmul.f32 %v911_v39, %v470_v29  ;;  %v1017_v10 = vsel %vm669_vm2, %v1010_v43, %v1009_v60  ;;  %v989_v11 = vpack.c.bf16 %v981_v34, %v981_v34 }
 0x4b5   : > { %v963_v57 = vadd.f32 %v962_v30, %v961_v5  ;;  %v958_v61 = vadd.f32 %v957_v51, %v956_v38  ;;  %v953_v44 = vadd.f32 %v952_v55, %v951_v37  ;;  %v1011_v62 = vunpack.c.l.b16 %v984_v52 }
 0x4b6   : > { %v968_v6 = vsel %vm377_vm0, %v924_v41, 0.0  ;;  %v1016_v17 = vunpack.c.l.b16 %v989_v11 }
 0x4b7   : > { %v964_v2 = vrot.slane %v963_v57, 2  ;;  %v969_v42 = vrot.slane %v968_v6, 4  ;;  %v959_v24 = vrot.slane %v958_v61, 1  ;;  %v985_v54 = vpack.c.bf16 %v953_v44, %v953_v44 }
 0x4b8   : > { %v1018_v13 = vsel %vm671_vm3, %v1011_v62, %v1017_v10 }
 0x4b9   : > { %v965_v46 = vadd.f32 %v964_v2, %v963_v57  ;;  %v970_v47 = vadd.f32 %v969_v42, %v968_v6  ;;  %v960_v49 = vadd.f32 %v959_v24, %v958_v61  ;;  %v1012_v1 = vunpack.c.l.b16 %v985_v54 }
 0x4bb   : > { %v966_v53 = vrot.slane %v965_v46, 1  ;;  %v971_v36 = vrot.slane %v970_v47, 2  ;;  %v986_v56 = vpack.c.bf16 %v960_v49, %v960_v49  ;;  %v1019_v4 = vsel %vm673_vm4, %v1012_v1, %v1018_v13 }
 0x4bd   : > { %v967_v3 = vadd.f32 %v966_v53, %v965_v46  ;;  %v972_v58 = vadd.f32 %v971_v36, %v970_v47  ;;  %v1013_v7 = vunpack.c.l.b16 %v986_v56 }
 0x4bf   : > { %v987_v45 = vpack.c.bf16 %v967_v3, %v967_v3  ;;  %v973_v63 = vrot.slane %v972_v58, 1  ;;  %v1020_v15 = vsel %vm675_vm5, %v1013_v7, %v1019_v4 }
 0x4c1   : > { %v974_v9 = vadd.f32 %v973_v63, %v972_v58  ;;  %v1014_v12 = vunpack.c.l.b16 %v987_v45 }
 0x4c3   : > { %v988_v14 = vpack.c.bf16 %v974_v9, %v974_v9  ;;  %v1021_v18 = vsel %vm677_vm6, %v1014_v12, %v1020_v15 }
 0x4c5   : > { %v1015_v16 = vunpack.c.l.b16 %v988_v14 }
 0x4c7   : > { %v1022_v19 = vsel %vm679_vm7, %v1015_v16, %v1021_v18 }
 0x4c8   : > { %v1023_v20 = vsel %vm681_vm8, %v1016_v17, %v1022_v19 }
 0x4c9   : > { %v1024_v21 = vpack.c.b16 %v1023_v20, %v1023_v20 }
 0x4cb   : > { %1221 = vmatmul.mubr.msk.bf16.vlgmr.msra.gmra.mxu1 %vm377_vm0, %v1024_v21 }
 0x58b   : > { %v1074_v23 = vpop.f32.mrf.mxu1 }
 0x58c   : > { %v1075_v26 = vadd.f32 %v1187_v22, %v1074_v23 }
 0x58d   : > { %v1222_v27 = vpop.f32.mrf.mxu1 }
 0x58e   : > { %1080 = vst [vmem:[%s314_s14] sm:$0xff] %v1075_v26 }
 0x58f   : > { %v1077_v28 = vpop.f32.mrf.mxu1 }
 0x590   : > { %1311 = shalt.err (!%p1308_p4)
}
 0x591   : > { %s1312_s27 = scalar_lea.hbm %s1650_s21, 128  ;;  %s1316_s11 = scalar_lea.hbm %s1699_s8, 512 }
 0x592   : > { %p1313_p7 = scmp.ne.s32.totalorder %s1650_s21, %s1312_s27  ;;  %p1317_p10 = scmp.lt.s32.totalorder %s1650_s21, %s1699_s8 }
 0x593   : > { %p1318_p11 = scmp.lt.s32.totalorder %s1316_s11, %s1312_s27 }
 0x594   : > { %p1314_p8 = pnand %p1313_p7, %p1450_p5 }
 0x595   : > { %p1319_p12 = por %p1318_p11, %p1317_p10 }
 0x596   : > { %p1315_p9 = pneg %p1314_p8 }
 0x598   : > { %p1320_p13 = pnand %p1319_p12, %p1315_p9 }
 0x59a   : > { %1323 = shalt.err (!%p1320_p13)
}
 0x59b   : > { %1224 = dma.vmem_to_hbm [thread:$0]  (%p1450_p5), %s1652_s18, 128, %s1650_s21, %s1082_s22   ;;  %v1223_v29 = vpop.f32.mrf.mxu1 }
 0x59c PF: > { %p1230_p0 = scmp.ge.s32.totalorder %s1358_s10, 2  ;;  %s1107_s19 = sand.u32 1, %s1346_s29  }
 0x59d   : > { %s1108_s20 = scalar_lea.sflag [#allocation4], %s1107_s19 }
 0x59e   : > { %p1227_p1 = pnand %p1230_p0, %p1454_p6 }
 0x5a0   : > { %p1228_p2 = pneg %p1227_p1 }
 0x5a2   : > { %1341 = dma.done.wait (%p1228_p2), %s1108_s20, 128  }
 0x5a3   : > { %1343 = vsyncadd (%p1228_p2), %s1108_s20, 4294967168  ;;  %p20_p3 = scmp.ge.s32.totalorder %s1437_s12, 6   ;;  %s1702_s29 = smov %s1350_s30 }
 0x5a4   : > { %s1703_s30 = smov %s1354_s9  ;;  %s1704_s9 = smov %s1448_s15 }
 0x5a5   : > { %s1705_s10 = smov %s1437_s12  ;;  %22 = sbr.rel (!%p20_p3) target bundleno = 6 (0x6), region = 90 }
 0x5aa   :  { %1113 = vsyncpa [#allocation4], 1 }
 0x5ab   :  { %1115 = vsyncpa [#allocation4 + $0x1], 1 }

</bundles_post_ra>
